<compile_context>
chip_gen: v6e
topology: v6e:2x2x1
jax: 0.10.0
libtpu: 0.0.40
codegen_flags: <defaults>
</compile_context>

<pallas_src>
import jax
import jax.numpy as jnp
from jax.experimental import pallas as pl
from jax.experimental.pallas import tpu as pltpu


def ry_kernel(cs_ref, x_ref, o_ref):
    # cs_ref: (2,) f32 in SMEM -> [cos(theta/2), sin(theta/2)]
    # x_ref / o_ref: (2, br, cols) VMEM tiles; axis 0 holds the two state rows.
    c = cs_ref[0]
    s = cs_ref[1]
    x0 = x_ref[0]
    x1 = x_ref[1]
    o_ref[0] = (c * x0 - s * x1).astype(o_ref.dtype)   # cos*x0 - sin*x1
    o_ref[1] = (s * x0 + c * x1).astype(o_ref.dtype)   # sin*x0 + cos*x1


def _pick_block_rows(rows8, *, max_block_rows, min_grid_steps):
    """rows8 is a positive multiple of 8.  Returns (br, steps) with
    br % 8 == 0, br | rows8, br <= max_block_rows, and steps >= min_grid_steps
    whenever rows8 is deep enough (>= 8 * min_grid_steps)."""
    m = rows8 // 8
    k_cap = min(max_block_rows // 8, max(1, m // min_grid_steps))
    k = 1
    for cand in range(k_cap, 0, -1):
        if m % cand == 0:
            k = cand
            break
    br = 8 * k
    return br, rows8 // br


def ry_forward(theta, x, *, block_cols=512, max_block_rows=512, min_grid_steps=8):
    """Apply RY(theta) rotation matrix to x of shape (2, N)."""
    assert x.ndim == 2 and x.shape[0] == 2, "x must be (2, N)"
    n = x.shape[1]
    dtype = x.dtype

    # Transcendentals hoisted out of the kernel (computed once, XLA side).
    theta = jnp.asarray(theta, dtype=jnp.float32)
    c = jnp.cos(theta * 0.5)
    s = jnp.sin(theta * 0.5)
    cs = jnp.stack([c, s]).astype(jnp.float32)           # (2,) -> SMEM

    cols = block_cols
    rows = n // cols
    rows8 = (rows // 8) * 8                              # sublane-aligned row groups
    n_main = rows8 * cols                                # aligned prefix (zero-copy)
    tail = n - n_main                                    # < 8*cols elements

    pieces = []

    if n_main > 0:
        br, steps = _pick_block_rows(
            rows8, max_block_rows=max_block_rows, min_grid_steps=min_grid_steps)

        # Zero-copy when tail == 0 (slice is a no-op, reshape is metadata-only).
        x_main = x[:, :n_main].reshape(2, rows8, cols)

        out_main = pl.pallas_call(
            ry_kernel,
            out_shape=jax.ShapeDtypeStruct((2, rows8, cols), dtype),
            grid=(steps,),
            in_specs=[
                pl.BlockSpec(memory_space=pltpu.SMEM),            # cos/sin scalars
                pl.BlockSpec((2, br, cols), lambda i: (0, i, 0)), # both rows, one slab
            ],
            out_specs=pl.BlockSpec((2, br, cols), lambda i: (0, i, 0)),
            compiler_params=pltpu.CompilerParams(
                dimension_semantics=("parallel",),   # v7x: shard steps across 2 TCs
                vmem_limit_bytes=32 * 1024 * 1024,   # 2 refs x 2 bufs x <=2 MiB fits
            ),
        )(cs, x_main)
        pieces.append(out_main.reshape(2, n_main))

    if tail > 0:
        # Tiny unaligned remainder (< 8*cols elements): plain-JAX epilogue.
        xt = x[:, n_main:]
        t0 = c * xt[0] - s * xt[1]
        t1 = s * xt[0] + c * xt[1]
        pieces.append(jnp.stack([t0, t1], axis=0).astype(dtype))

    if len(pieces) == 1:
        return pieces[0].astype(dtype)
    return jnp.concatenate(pieces, axis=1).astype(dtype)


def _reference(theta, x):
    c = jnp.cos(theta / 2)
    s = jnp.sin(theta / 2)
    matrix = jnp.stack([c, -s, s, c]).reshape(2, 2)
    return jnp.matmul(matrix, x, precision=jax.lax.Precision.HIGHEST)


if __name__ == "__main__":
    key = jax.random.PRNGKey(0)

    # Deterministic parameter (nn.Parameter(theta) in the module): a scalar angle.
    theta = jnp.float32(0.3)
    k1, k2, k3 = jax.random.split(key, 3)

    # Case 1: aligned N -> pure kernel path, 8 grid steps, zero wrapper copies.
    N1 = 64 * 512  # 32768
    x1 = jax.random.normal(k1, (2, N1), dtype=jnp.float32)
    out1 = jax.block_until_ready(ry_forward(theta, x1))
    assert out1.shape == (2, N1)
    assert jnp.allclose(out1, _reference(theta, x1), atol=1e-5, rtol=1e-5)

    # Case 2: unaligned N -> kernel on the aligned prefix + tiny plain-JAX tail.
    N2 = 8 * 512 + 300
    x2 = jax.random.normal(k2, (2, N2), dtype=jnp.float32)
    out2 = jax.block_until_ready(ry_forward(theta, x2))
    assert out2.shape == (2, N2)
    assert jnp.allclose(out2, _reference(theta, x2), atol=1e-5, rtol=1e-5)

    # Case 3: tiny N (< 8*cols) -> plain-JAX path only (launch not worth it).
    N3 = 300
    x3 = jax.random.normal(k3, (2, N3), dtype=jnp.float32)
    out3 = jax.block_until_ready(ry_forward(theta, x3))
    assert out3.shape == (2, N3)
    assert jnp.allclose(out3, _reference(theta, x3), atol=1e-5, rtol=1e-5)

    print("KERNEL_OK")
</pallas_src>

<mosaic_0001>
module attributes {stable_mosaic.version = 11 : i64} {
  func.func @ry_kernel(%arg0: i32, %arg1: memref<2xf32, #tpu.memory_space<smem>>, %arg2: memref<2x8x512xf32, #tpu.memory_space<vmem>>, %arg3: memref<2x8x512xf32, #tpu.memory_space<vmem>>) attributes {dimension_semantics = [#tpu.dimension_semantics<parallel>], iteration_bounds = array<i64: 8>, scalar_prefetch = 0 : i64, scratch_operands = 0 : i64, tpu.core_type = #tpu.core_type<tc>, window_params = [{transform_indices = @transform_0, window_bounds = array<i64: 2>}, {transform_indices = @transform_1, window_bounds = array<i64: 2, 8, 512>}, {transform_indices = @transform_2, window_bounds = array<i64: 2, 8, 512>}]} {
    %c0 = arith.constant 0 : index
    %0 = memref.load %arg1[%c0] : memref<2xf32, #tpu.memory_space<smem>>
    %c1 = arith.constant 1 : index
    %1 = memref.load %arg1[%c1] : memref<2xf32, #tpu.memory_space<smem>>
    %c0_0 = arith.constant 0 : index
    %c0_1 = arith.constant 0 : index
    %c0_2 = arith.constant 0 : index
    %2 = vector.load %arg2[%c0_0, %c0_1, %c0_2] : memref<2x8x512xf32, #tpu.memory_space<vmem>>, vector<1x8x512xf32>
    %3 = vector.shape_cast %2 : vector<1x8x512xf32> to vector<8x512xf32>
    %c1_3 = arith.constant 1 : index
    %c0_4 = arith.constant 0 : index
    %c0_5 = arith.constant 0 : index
    %4 = vector.load %arg2[%c1_3, %c0_4, %c0_5] : memref<2x8x512xf32, #tpu.memory_space<vmem>>, vector<1x8x512xf32>
    %5 = vector.shape_cast %4 : vector<1x8x512xf32> to vector<8x512xf32>
    %6 = vector.broadcast %0 : f32 to vector<8x512xf32>
    %7 = arith.mulf %6, %3 : vector<8x512xf32>
    %8 = vector.broadcast %1 : f32 to vector<8x512xf32>
    %9 = arith.mulf %8, %5 : vector<8x512xf32>
    %10 = arith.subf %7, %9 : vector<8x512xf32>
    %c0_6 = arith.constant 0 : index
    %c0_7 = arith.constant 0 : index
    %c0_8 = arith.constant 0 : index
    %11 = vector.load %arg3[%c0_6, %c0_7, %c0_8] : memref<2x8x512xf32, #tpu.memory_space<vmem>>, vector<1x8x512xf32>
    %12 = vector.shape_cast %11 : vector<1x8x512xf32> to vector<8x512xf32>
    %13 = vector.shape_cast %10 : vector<8x512xf32> to vector<1x8x512xf32>
    tpu.vector_store %arg3[%c0_6, %c0_7, %c0_8], %13 {strides = array<i32>} : memref<2x8x512xf32, #tpu.memory_space<vmem>>, vector<1x8x512xf32>,
    %14 = vector.broadcast %1 : f32 to vector<8x512xf32>
    %15 = arith.mulf %14, %3 : vector<8x512xf32>
    %16 = vector.broadcast %0 : f32 to vector<8x512xf32>
    %17 = arith.mulf %16, %5 : vector<8x512xf32>
    %18 = arith.addf %15, %17 : vector<8x512xf32>
    %c1_9 = arith.constant 1 : index
    %c0_10 = arith.constant 0 : index
    %c0_11 = arith.constant 0 : index
    %19 = vector.load %arg3[%c1_9, %c0_10, %c0_11] : memref<2x8x512xf32, #tpu.memory_space<vmem>>, vector<1x8x512xf32>
    %20 = vector.shape_cast %19 : vector<1x8x512xf32> to vector<8x512xf32>
    %21 = vector.shape_cast %18 : vector<8x512xf32> to vector<1x8x512xf32>
    tpu.vector_store %arg3[%c1_9, %c0_10, %c0_11], %21 {strides = array<i32>} : memref<2x8x512xf32, #tpu.memory_space<vmem>>, vector<1x8x512xf32>,
    return
  }
  func.func @transform_0(%arg0: i32) -> i32 {
    %c0_i32 = arith.constant 0 : i32
    %c0_i32_0 = arith.constant 0 : i32
    return %c0_i32 : i32
  }
  func.func @transform_1(%arg0: i32) -> (i32, i32, i32) {
    %c0_i32 = arith.constant 0 : i32
    %c0_i32_0 = arith.constant 0 : i32
    %c0_i32_1 = arith.constant 0 : i32
    return %c0_i32, %arg0, %c0_i32_0 : i32, i32, i32
  }
  func.func @transform_2(%arg0: i32) -> (i32, i32, i32) {
    %c0_i32 = arith.constant 0 : i32
    %c0_i32_0 = arith.constant 0 : i32
    %c0_i32_1 = arith.constant 0 : i32
    return %c0_i32, %arg0, %c0_i32_0 : i32, i32, i32
  }
}

</mosaic_0001>

<bundles_post_ra>
// kernel: tpu_custom_call.1
= control target key start
LH: loop header
LB: loop body
LE: loop exit
PB: predicated region body
PF: predicated region fallthrough
CT: control target
= control target key end

     0   :  { %7 = vsyncpa [#allocation5], 0  ;;  %s713_s0 = inlined_call_operand.hbm [shape: f32[2], index: 0, kind: input, shape index: {}]   ;;  %s714_s1 = inlined_call_operand.hbm [shape: f32[2,64,512], index: 1, kind: input, shape index: {}]   ;;  %s715_s2 = inlined_call_operand.hbm [shape: f32[2,64,512], index: 2, kind: output, shape index: {}]  }
   0x1   :  { %8 = vsyncpa [#allocation3], 0 }
   0x2   :  { %10 = vsyncpa [#allocation3 + $0x1], 0 }
   0x3   :  { %11 = vsyncpa [#allocation4], 0 }
   0x4   :  { %13 = vsyncpa [#allocation4 + $0x1], 0  ;;  %s542_s9 = smov 0   ;;  %s544_s10 = smov 0  }
   0x5   :  { %s546_s11 = smov 0   ;;  %s548_s12 = smov 0  }
   0x6 LB: > { %s563_s13 = sadd.s32 4294967295, %s516_s12   ;;  %s319_s14 = sadd.s32 4294967294, %s516_s12   ;;  %s516_s12 = sphi %s548_s12, %s735_s12   ;;  %s512_s11 = sphi %s546_s11, %s734_s11   ;;  %s508_s10 = sphi %s544_s10, %s733_s10   ;;  %s504_s9 = sphi %s542_s9, %s732_s9  }
   0x7   : > { %s567_s15 = sadd.s32 1, %s516_s12   ;;  %s47_s16 = sadd.s32 1, %s512_s11 }
   0x8   : > { %s44_s17 = ssub.s32 %s516_s12, %s567_s15  ;;  %p54_p0 = scmp.ne.s32.totalorder %s512_s11, %s508_s10 }
   0x9   : > { %p45_p1 = scmp.eq.s32.totalorder %s44_s17, 0  ;;  %p55_p2 = scmp.eq.s32.totalorder %s516_s12, 0 }
   0xa   : > { %p60_p3 = scmp.ne.s32.totalorder %s508_s10, %s504_s9  ;;  %p717_p4 = scmp.eq.s32.totalorder %s563_s13, 0 }
   0xb   : > { %s579_s18 = scalar_select %p45_p1, %s512_s11, %s47_s16  }
   0xc   : > { %p581_p5 = por %p55_p2, %p54_p0  ;;  %p587_p6 = por %p717_p4, %p60_p3 }
   0xd   : > { %p84_p7 = scmp.eq.s32.totalorder %s563_s13, 7  ;;  %p90_p8 = scmp.eq.s32.totalorder %s319_s14, 7 }
   0xe   : > { %s721_s20 = scalar_select %p587_p6, 1, 0 }
   0xf   : > { %p320_p9 = scmp.ge.s32.totalorder %s516_s12, 1  ;;  %p97_p10 = scmp.lt.s32.totalorder %s516_s12, 9 }
  0x10   : > { %p594_p11 = por %p84_p7, %p54_p0  ;;  %p598_p12 = por %p90_p8, %p60_p3 }
  0x11   : > { %p602_p13 = pnand %p320_p9, %p97_p10  ;;  %p367_p2 = scmp.lt.s32.totalorder %s516_s12, 8 }
  0x12   : > { %s722_s21 = scalar_select %p594_p11, 1, 0 }
  0x13   : > { %s723_s22 = scalar_select %p598_p12, 1, 0 }
  0x14   : > { %s724_s23 = scalar_select %p602_p13, 1, 0 }
  0x15   : > { %p354_p1 = pneg %p602_p13  ;;  %s119_s24 = sand.u32 1, %s512_s11  }
  0x16   : > { %s344_s25 = sshll.u32 %s516_s12, 9  ;;  %p615_p0 = pnand %p367_p2, %p581_p5 }
  0x17   : > { %p355_p6 = pnand %p354_p1, %p717_p4  ;;  %s323_s27 = sshll.u32 %s119_s24, 6 }
  0x18   : > { %s518_s28 = smov [#allocation2]   ;;  %s625_s5 = scalar_lea.hbm %s714_s1, %s344_s25 }
  0x19   : > { %357 = dma.hbm_to_smem (!%p355_p6), %s713_s0, 16, %s518_s28, [#allocation5]  }
  0x1a   : > { %s123_s6 = scalar_lea.vmem [#allocation6], %s323_s27  ;;  %s629_s8 = scalar_lea.sflag [#allocation3], %s119_s24 }
  0x1b   : > { %s130_s7 = sshll.u32 %s123_s6, 4  ;;  %s420_s14 = scalar_lea.hbm %s625_s5, 1024  ;;  %s627_s7 = int_to_ptr.vmem [resolvable:$true] %s130_s7 }
  0x1c   : > { %p421_p3 = scmp.ne.s32.totalorder %s625_s5, %s420_s14  ;;  %p422_p5 = pneg %p615_p0 }
  0x1d   : > { %s425_s19 = scalar_lea.hbm %s714_s1, 8192  ;;  %p426_p8 = scmp.lt.s32.totalorder %s625_s5, %s714_s1 }
  0x1e   : > { %p423_p7 = pnand %p422_p5, %p421_p3  ;;  %p427_p9 = scmp.lt.s32.totalorder %s425_s19, %s420_s14 }
  0x20   : > { %p424_p6 = pneg %p423_p7  ;;  %p428_p10 = por %p427_p9, %p426_p8 }
  0x22   : > { %p429_p1 = pnand %p428_p10, %p424_p6 }
  0x24   : > { %432 = shalt.err (!%p429_p1)
}
  0x25   : > { %s433_s24 = scalar_lea.vmem %s627_s7, 1024  ;;  %s519_s27 = smov [#allocation6]  }
  0x26   : > { %p434_p2 = scmp.ne.s32.totalorder %s627_s7, %s433_s24  ;;  %s438_s29 = sshll.u32 %s519_s27, 4  ;;  %s439_s29 = int_to_ptr.vmem [resolvable:$false] %s438_s29 }
  0x27   : > { %s440_s30 = scalar_lea.vmem %s439_s29, 2048  ;;  %p441_p7 = scmp.lt.s32.totalorder %s627_s7, %s439_s29 }
  0x28   : > { %p436_p4 = pnand %p434_p2, %p422_p5  ;;  %p442_p12 = scmp.lt.s32.totalorder %s440_s30, %s433_s24 }
  0x2a   : > { %p437_p3 = pneg %p436_p4  ;;  %p443_p11 = por %p442_p12, %p441_p7 }
  0x2c   : > { %p444_p13 = pnand %p443_p11, %p437_p3 }
  0x2e   : > { %447 = shalt.err (!%p444_p13)
}
  0x2f   : > { %s520_s3 = smov 4096   ;;  %s521_s4 = smov 512  }
  0x30   : > { %s522_s6 = smov 32   ;;  %p726_p4 = scmp.ne.s32.totalorder %s724_s23, 0 }
  0x31   : > { %361 = dma.hbm_to_vmem [thread:$0]  (!%p615_p0), %s625_s5, 1024, %s627_s7, %s629_s8, %s520_s3, %s521_s4, %s522_s6  }
  0x32   : > { %142 = sbr.rel (%p726_p4) target bundleno = 93 (0x5d), region = 28  ;;  %p727_p5 = scmp.eq.s32.totalorder (!%p726_p4), %s563_s13, 0 }
  0x37   : > { %491 = dma.done.wait (%p727_p5), [#allocation5], 16   ;;  %p728_p6 = pmov %p727_p5 }
  0x38   : > { %s657_s14 = sand.u32 1, %s508_s10   ;;  %p729_p11 = scmp.ne.s32.totalorder %s721_s20, 0 }
  0x39   : > { %493 = vsyncadd (%p728_p6), [#allocation5], 4294967280  ;;  %s328_s16 = sshll.u32 %s657_s14, 6  ;;  %s149_s17 = scalar_lea.sflag [#allocation3], %s657_s14 }
  0x3a   : > { %s152_s19 = scalar_lea.vmem [#allocation6], %s328_s16 }
  0x3b   : > { %495 = dma.done.wait (%p729_p11), %s149_s17, 1024  }
  0x3c   : > { %497 = vsyncadd (%p729_p11), %s149_s17, 4294966272 }
  0x3d   : > { %157 = sfence }
  0x3e   : > { %s174_s23 = sld [smem:[#allocation2]]  ;;  %v176_v0 = vld [vmem:[%s152_s19] sm:$0xff]  ;;  %v177_v2 = vld [vmem:[%s152_s19 + $0x8] sm:$0xff]  ;;  %v178_v3 = vld [vmem:[%s152_s19 + $0x10] sm:$0xff]  ;;  %s173_s20 = scalar_lea.vmem [#allocation7], %s328_s16 }
  0x3f   : > { %s330_s26 = sld [smem:[#allocation2 + $0x1]]  ;;  %v331_v1 = vld [vmem:[%s152_s19 + $0x20] sm:$0xff]  ;;  %v332_v4 = vld [vmem:[%s152_s19 + $0x28] sm:$0xff]  ;;  %v333_v5 = vld [vmem:[%s152_s19 + $0x30] sm:$0xff]  ;;  %s234_s5 = sshll.u32 %s173_s20, 4  ;;  %s666_s5 = int_to_ptr.vmem [resolvable:$true] %s234_s5 }
  0x40   : > { %v179_v6 = vld [vmem:[%s152_s19 + $0x18] sm:$0xff]  ;;  %s345_s7 = sshll.u32 %s563_s13, 9  ;;  %s221_s28 = scalar_lea.sflag [#allocation4], %s657_s14 }
  0x41   : > { %v334_v8 = vld [vmem:[%s152_s19 + $0x38] sm:$0xff]  ;;  %s671_s25 = scalar_lea.hbm %s715_s2, %s345_s7  ;;  %s448_s24 = scalar_lea.vmem %s666_s5, 1024 }
  0x42   : > { %p449_p12 = scmp.ne.s32.totalorder %s666_s5, %s448_s24  ;;  %p730_p13 = scmp.ne.s32.totalorder %s722_s21, 0 }
  0x43   : > { %s523_s27 = smov [#allocation7]  }
  0x44   : > { %v185_v7 = vstv %s174_s23  ;;  %p450_p0 = pnand %p449_p12, %p730_p13  ;;  %s452_s29 = sshll.u32 %s523_s27, 4  ;;  %s453_s29 = int_to_ptr.vmem [resolvable:$false] %s452_s29 }
  0x45   : > { %v186_v9 = vmul.f32 %v185_v7, %v176_v0  ;;  %v190_v10 = vstv %s330_s26  ;;  %v187_v11 = vmul.f32 %v185_v7, %v177_v2  ;;  %v188_v12 = vmul.f32 %v185_v7, %v178_v3  ;;  %s454_s30 = scalar_lea.vmem %s453_s29, 2048  ;;  %p455_p9 = scmp.lt.s32.totalorder %s666_s5, %s453_s29 }
  0x46   : > { %v191_v13 = vmul.f32 %v331_v1, %v190_v10  ;;  %v192_v14 = vmul.f32 %v332_v4, %v190_v10  ;;  %v193_v15 = vmul.f32 %v333_v5, %v190_v10  ;;  %v189_v16 = vmul.f32 %v185_v7, %v179_v6  ;;  %p451_p8 = pneg %p450_p0  ;;  %p456_p10 = scmp.lt.s32.totalorder %s454_s30, %s448_s24 }
  0x47   : > { %v194_v17 = vmul.f32 %v334_v8, %v190_v10  ;;  %v203_v18 = vmul.f32 %v190_v10, %v176_v0  ;;  %v207_v19 = vmul.f32 %v331_v1, %v185_v7  ;;  %v204_v20 = vmul.f32 %v190_v10, %v177_v2 }
  0x48   : > { %v195_v21 = vsub.f32 %v186_v9, %v191_v13  ;;  %v196_v22 = vsub.f32 %v187_v11, %v192_v14  ;;  %v197_v23 = vsub.f32 %v188_v12, %v193_v15  ;;  %v208_v24 = vmul.f32 %v332_v4, %v185_v7  ;;  %p457_p1 = por %p456_p10, %p455_p9 }
  0x49   : > { %v198_v25 = vsub.f32 %v189_v16, %v194_v17  ;;  %v211_v26 = vadd.f32 %v207_v19, %v203_v18  ;;  %v205_v27 = vmul.f32 %v190_v10, %v178_v3  ;;  %v209_v28 = vmul.f32 %v333_v5, %v185_v7 }
  0x4a   : > { %199 = vst [vmem:[%s173_s20] sm:$0xff] %v195_v21  ;;  %200 = vst [vmem:[%s173_s20 + $0x8] sm:$0xff] %v196_v22  ;;  %v212_v29 = vadd.f32 %v208_v24, %v204_v20  ;;  %v206_v30 = vmul.f32 %v190_v10, %v179_v6  ;;  %v210_v31 = vmul.f32 %v334_v8, %v185_v7  ;;  %p458_p2 = pnand %p457_p1, %p451_p8 }
  0x4b   : > { %201 = vst [vmem:[%s173_s20 + $0x10] sm:$0xff] %v197_v23  ;;  %202 = vst [vmem:[%s173_s20 + $0x18] sm:$0xff] %v198_v25  ;;  %v213_v32 = vadd.f32 %v209_v28, %v205_v27 }
  0x4c   : > { %335 = vst [vmem:[%s173_s20 + $0x20] sm:$0xff] %v211_v26  ;;  %336 = vst [vmem:[%s173_s20 + $0x28] sm:$0xff] %v212_v29  ;;  %v214_v33 = vadd.f32 %v210_v31, %v206_v30 }
  0x4d   : > { %337 = vst [vmem:[%s173_s20 + $0x30] sm:$0xff] %v213_v32 }
  0x4e   : > { %338 = vst [vmem:[%s173_s20 + $0x38] sm:$0xff] %v214_v33 }
  0x4f   : > { %461 = shalt.err (!%p458_p2)
}
  0x50   : > { %s462_s3 = scalar_lea.hbm %s671_s25, 1024  ;;  %s466_s16 = scalar_lea.hbm %s715_s2, 8192 }
  0x51   : > { %p463_p3 = scmp.ne.s32.totalorder %s671_s25, %s462_s3  ;;  %p467_p5 = scmp.lt.s32.totalorder %s671_s25, %s715_s2 }
  0x52   : > { %p468_p6 = scmp.lt.s32.totalorder %s466_s16, %s462_s3 }
  0x53   : > { %p464_p7 = pnand %p463_p3, %p730_p13 }
  0x54   : > { %p469_p11 = por %p468_p6, %p467_p5 }
  0x55   : > { %p465_p4 = pneg %p464_p7 }
  0x57   : > { %p470_p12 = pnand %p469_p11, %p465_p4 }
  0x59   : > { %473 = shalt.err (!%p470_p12)
}
  0x5a   : > { %s524_s23 = smov 512   ;;  %s525_s26 = smov 4096  }
  0x5b   : > { %s526_s20 = smov 32  }
  0x5c   : > { %352 = dma.vmem_to_hbm [thread:$0]  (%p730_p13), %s666_s5, 1024, %s671_s25, %s221_s28, %s524_s23, %s525_s26, %s526_s20  }
  0x5d PF: > { %p369_p0 = scmp.ge.s32.totalorder %s516_s12, 2  ;;  %s249_s7 = sand.u32 1, %s504_s9  }
  0x5e   : > { %p731_p8 = scmp.ne.s32.totalorder %s723_s22, 0  ;;  %s250_s13 = scalar_lea.sflag [#allocation4], %s249_s7 }
  0x60   : > { %p363_p9 = pnand %p369_p0, %p731_p8 }
  0x62   : > { %p364_p10 = pneg %p363_p9 }
  0x64   : > { %499 = dma.done.wait (%p364_p10), %s250_s13, 1024  }
  0x65   : > { %501 = vsyncadd (%p364_p10), %s250_s13, 4294966272  ;;  %p16_p1 = scmp.ge.s32.totalorder %s567_s15, 10   ;;  %s732_s9 = smov %s508_s10 }
  0x66   : > { %s733_s10 = smov %s512_s11  ;;  %s734_s11 = smov %s579_s18 }
  0x67   : > { %s735_s12 = smov %s567_s15  ;;  %18 = sbr.rel (!%p16_p1) target bundleno = 6 (0x6), region = 80 }
  0x6c   :  { %255 = vsyncpa [#allocation3], 1 }
  0x6d   :  { %257 = vsyncpa [#allocation3 + $0x1], 1 }
  0x6e   :  { %258 = vsyncpa [#allocation4], 1 }
  0x6f   :  { %260 = vsyncpa [#allocation4 + $0x1], 1 }
  0x70   :  { %261 = vsyncpa [#allocation5], 1 }
  0x71   :  { %263 = vsyncpa [#allocation5 + $0x1], 1 }

</bundles_post_ra>
